<compile_context>
chip_gen: v5e
topology: v5e:2x2
jax: 0.10.0
libtpu: 0.0.40
codegen_flags: <defaults>
</compile_context>

<pallas_src>
import functools

import jax
import jax.numpy as jnp
from jax.experimental import pallas as pl
from jax.experimental.pallas import tpu as pltpu

BN_EPS = 1e-5
_LANE = 128      # vreg lane width
_SUBLANE = 8     # vreg sublane width


def _round_up(v, m):
    return (v + m - 1) // m * m


# --------------------------------------------------------------------------------------
# Kernel body: BN already folded into (w1', b1'); dropout is identity in eval mode.
# Weights arrive pre-cast to compute_dtype; only the x tile is cast in-register.
# --------------------------------------------------------------------------------------
def _mlp_kernel(x_ref, w1_ref, b1_ref, w2_ref, b2_ref, o_ref, *, compute_dtype):
    x = x_ref[...].astype(compute_dtype)

    # linear_1 (+ folded BatchNorm): x @ W1' + b1'
    h = jnp.dot(x, w1_ref[...], preferred_element_type=jnp.float32)
    h = jnp.tanh(h + b1_ref[...])            # padded lanes stay exactly 0: tanh(0) = 0

    # dropout: identity in eval mode

    # linear_2: h @ W2' + b2'  (output emitted at true width N)
    o_ref[...] = (jnp.dot(h.astype(compute_dtype), w2_ref[...],
                          preferred_element_type=jnp.float32)
                  + b2_ref[...]).astype(o_ref.dtype)


# --------------------------------------------------------------------------------------
# One-time parameter prep: fold eval-mode BN into linear_1, pre-transpose both Linear
# weights, zero-pad the hidden dim to 128 lanes, and pre-cast weights to compute_dtype.
# --------------------------------------------------------------------------------------
def prepare_params(params, *, compute_dtype=jnp.float32):
    w1 = params["w1"].astype(jnp.float32)            # (H, K)   PyTorch layout (out, in)
    b1 = params["b1"].astype(jnp.float32)            # (H,)
    w2 = params["w2"].astype(jnp.float32)            # (N, H)
    b2 = params["b2"].astype(jnp.float32)            # (N,)
    gamma = params["bn_gamma"].astype(jnp.float32)
    beta = params["bn_beta"].astype(jnp.float32)
    rm = params["bn_running_mean"].astype(jnp.float32)
    rv = params["bn_running_var"].astype(jnp.float32)

    H, K = w1.shape
    N = w2.shape[0]
    H_pad = _round_up(H, _LANE)

    # Fold BN: y = ((x@W1^T + b1) - rm) * gamma/sqrt(rv+eps) + beta
    scale = gamma * jax.lax.rsqrt(rv + BN_EPS)       # (H,)
    w1f = w1.T * scale[None, :]                      # (K, H)
    b1f = (b1 - rm) * scale + beta                   # (H,)

    # Zero-pad hidden dim to lane-dense shape (exact; see header).  Output dim N is
    # left at its true width so the kernel's writeback is only B*N elements.
    w1f = jnp.pad(w1f, ((0, 0), (0, H_pad - H))).astype(compute_dtype)     # (K, H_pad)
    b1f = jnp.pad(b1f, (0, H_pad - H)).reshape(1, H_pad)                   # (1, H_pad) f32
    w2f = jnp.pad(w2.T, ((0, H_pad - H), (0, 0))).astype(compute_dtype)    # (H_pad, N)
    b2f = b2.reshape(1, N)                                                 # (1, N)     f32

    return {"w1f": w1f, "b1f": b1f, "w2f": w2f, "b2f": b2f,
            "size_in": K, "size_out": N, "compute_dtype": compute_dtype}


# --------------------------------------------------------------------------------------
# Wrapper: batch-tiled pallas_call with VMEM-resident weights.
# --------------------------------------------------------------------------------------
def my_model_forward(x, prepared, *, tile_b=2048, out_dtype=jnp.float32):
    """x: (B, size_in), any float dtype. `prepared` comes from prepare_params()."""
    B, K = x.shape
    assert K == prepared["size_in"]
    compute_dtype = prepared["compute_dtype"]

    w1f, b1f = prepared["w1f"], prepared["b1f"]
    w2f, b2f = prepared["w2f"], prepared["b2f"]
    H_pad = w1f.shape[1]
    N = w2f.shape[1]

    # ---- batch tiling: big tiles (amortize ~0.35us/step), >= 2 tiles when possible ----
    tb_cap = max(_SUBLANE, min(_round_up(tile_b, _SUBLANE), _round_up(B, _SUBLANE)))
    num_tiles = pl.cdiv(B, tb_cap)
    if num_tiles < 2 and B >= 2 * _SUBLANE:
        num_tiles = 2                                 # v7x: give both TensorCores work
    TB = _round_up(pl.cdiv(B, num_tiles), _SUBLANE)
    num_tiles = pl.cdiv(B, TB)
    B_pad = num_tiles * TB
    if B_pad != B:
        # Only the ragged last tile is padded (explicit zeros keep the math exact).
        x = jnp.pad(x, ((0, B_pad - B), (0, 0)))

    # ---- cost estimate (lets XLA overlap this small mem-bound call) ----
    x_bytes = jnp.dtype(x.dtype).itemsize
    w_bytes = jnp.dtype(compute_dtype).itemsize
    o_bytes = jnp.dtype(out_dtype).itemsize
    flops = 2 * B_pad * K * H_pad + 2 * B_pad * H_pad * N
    bytes_accessed = (B_pad * K * x_bytes
                      + (K * H_pad + H_pad * N) * w_bytes + (H_pad + N) * 4
                      + B_pad * N * o_bytes)
    cost = pl.CostEstimate(flops=int(flops),
                           transcendentals=int(B_pad * H_pad),
                           bytes_accessed=int(bytes_accessed))

    # ---- VMEM budget: resident weights + double-buffered x/out tiles + f32 h tile ----
    vmem_needed = ((K * H_pad + H_pad * N) * w_bytes + (H_pad + N) * 4
                   + 2 * TB * K * x_bytes + 2 * TB * N * o_bytes
                   + 2 * TB * H_pad * 4)
    vmem_limit = None
    if vmem_needed > 14 * 1024 * 1024:                # above smallest (v5e) scoped default
        vmem_limit = min(int(vmem_needed * 3 // 2), 64 * 1024 * 1024)

    kernel = functools.partial(_mlp_kernel, compute_dtype=compute_dtype)

    out = pl.pallas_call(
        kernel,
        out_shape=jax.ShapeDtypeStruct((B_pad, N), out_dtype),
        grid=(num_tiles,),
        in_specs=[
            pl.BlockSpec((TB, K), lambda i: (i, 0)),        # x: tiled over batch
            pl.BlockSpec((K, H_pad), lambda i: (0, 0)),     # W1' (BN folded), VMEM-resident
            pl.BlockSpec((1, H_pad), lambda i: (0, 0)),     # b1'
            pl.BlockSpec((H_pad, N), lambda i: (0, 0)),     # W2' (true-width N)
            pl.BlockSpec((1, N), lambda i: (0, 0)),         # b2'
        ],
        out_specs=pl.BlockSpec((TB, N), lambda i: (i, 0)),  # true-width N, no wrapper slice
        compiler_params=pltpu.CompilerParams(
            dimension_semantics=("parallel",),              # shard batch tiles over TCs
            vmem_limit_bytes=vmem_limit),
        cost_estimate=cost,
    )(x, w1f, b1f, w2f, b2f)

    if B_pad != B:
        out = out[:B]
    return out


# --------------------------------------------------------------------------------------
# Param init mimicking PyTorch defaults + plain-JAX reference (unfused, eval mode).
# --------------------------------------------------------------------------------------
def init_params(key, size_in, size_hide, size_out):
    k1, k2, k3, k4 = jax.random.split(key, 4)
    bound1 = 1.0 / (size_in ** 0.5)
    bound2 = 1.0 / (size_hide ** 0.5)
    return {
        "w1": jax.random.uniform(k1, (size_hide, size_in), jnp.float32, -bound1, bound1),
        "b1": jax.random.uniform(k2, (size_hide,), jnp.float32, -bound1, bound1),
        "bn_gamma": jnp.ones((size_hide,), jnp.float32),
        "bn_beta": jnp.zeros((size_hide,), jnp.float32),
        "bn_running_mean": jnp.zeros((size_hide,), jnp.float32),
        "bn_running_var": jnp.ones((size_hide,), jnp.float32),
        "w2": jax.random.uniform(k3, (size_out, size_hide), jnp.float32, -bound2, bound2),
        "b2": jax.random.uniform(k4, (size_out,), jnp.float32, -bound2, bound2),
    }


def reference_forward(x, params):
    x = x.astype(jnp.float32)
    h = x @ params["w1"].T + params["b1"]
    h = ((h - params["bn_running_mean"])
         / jnp.sqrt(params["bn_running_var"] + BN_EPS)
         * params["bn_gamma"] + params["bn_beta"])
    h = jnp.tanh(h)
    return h @ params["w2"].T + params["b2"]


if __name__ == "__main__":
    key = jax.random.PRNGKey(0)
    kx, kp = jax.random.split(key)

    B, size_in, size_hide, size_out = 8, 32, 64, 16
    x = jax.random.normal(kx, (B, size_in), jnp.float32)
    params = init_params(kp, size_in, size_hide, size_out)

    prepared = prepare_params(params)          # one-time BN fold + lane padding + pre-cast
    out = my_model_forward(x, prepared)
    out = jax.block_until_ready(out)

    ref = reference_forward(x, params)
    assert out.shape == (B, size_out)
    assert jnp.allclose(out, ref, atol=1e-4, rtol=1e-4), "mismatch vs reference"

    print("KERNEL_OK")
</pallas_src>

<mosaic_0001>
module attributes {stable_mosaic.version = 11 : i64} {
  func.func @_mlp_kernel(%arg0: i32, %arg1: memref<8x32xf32, #tpu.memory_space<vmem>>, %arg2: memref<32x128xf32, #tpu.memory_space<vmem>>, %arg3: memref<1x128xf32, #tpu.memory_space<vmem>>, %arg4: memref<128x16xf32, #tpu.memory_space<vmem>>, %arg5: memref<1x16xf32, #tpu.memory_space<vmem>>, %arg6: memref<8x16xf32, #tpu.memory_space<vmem>>) attributes {dimension_semantics = [#tpu.dimension_semantics<parallel>], iteration_bounds = array<i64: 1>, scalar_prefetch = 0 : i64, scratch_operands = 0 : i64, tpu.core_type = #tpu.core_type<tc>, window_params = [{transform_indices = @transform_0, window_bounds = array<i64: 8, 32>}, {pipeline_mode = #tpu.pipeline_mode<synchronous>, transform_indices = @transform_1, window_bounds = array<i64: 32, 128>}, {pipeline_mode = #tpu.pipeline_mode<synchronous>, transform_indices = @transform_2, window_bounds = array<i64: 1, 128>}, {pipeline_mode = #tpu.pipeline_mode<synchronous>, transform_indices = @transform_3, window_bounds = array<i64: 128, 16>}, {pipeline_mode = #tpu.pipeline_mode<synchronous>, transform_indices = @transform_4, window_bounds = array<i64: 1, 16>}, {transform_indices = @transform_5, window_bounds = array<i64: 8, 16>}]} {
    %c0 = arith.constant 0 : index
    %c0_0 = arith.constant 0 : index
    %0 = vector.load %arg1[%c0, %c0_0] : memref<8x32xf32, #tpu.memory_space<vmem>>, vector<8x32xf32>
    %c0_1 = arith.constant 0 : index
    %c0_2 = arith.constant 0 : index
    %1 = vector.load %arg2[%c0_1, %c0_2] : memref<32x128xf32, #tpu.memory_space<vmem>>, vector<32x128xf32>
    %cst = arith.constant dense<0.000000e+00> : vector<8x128xf32>
    %2 = tpu.matmul %0, %1, %cst {dimension_numbers = #tpu.dot_dimension_numbers<[1], [0], [0], [1], [0, 0, 1, 1], [], []>} : vector<8x32xf32>, vector<32x128xf32>, vector<8x128xf32> -> vector<8x128xf32>
    %c0_3 = arith.constant 0 : index
    %c0_4 = arith.constant 0 : index
    %3 = vector.load %arg3[%c0_3, %c0_4] : memref<1x128xf32, #tpu.memory_space<vmem>>, vector<1x128xf32>
    %4 = vector.broadcast %3 : vector<1x128xf32> to vector<8x128xf32>
    %5 = arith.addf %2, %4 : vector<8x128xf32>
    %6 = math.tanh %5 : vector<8x128xf32>
    %c0_5 = arith.constant 0 : index
    %c0_6 = arith.constant 0 : index
    %7 = vector.load %arg4[%c0_5, %c0_6] : memref<128x16xf32, #tpu.memory_space<vmem>>, vector<128x16xf32>
    %cst_7 = arith.constant dense<0.000000e+00> : vector<8x16xf32>
    %8 = tpu.matmul %6, %7, %cst_7 {dimension_numbers = #tpu.dot_dimension_numbers<[1], [0], [0], [1], [0, 0, 1, 1], [], []>} : vector<8x128xf32>, vector<128x16xf32>, vector<8x16xf32> -> vector<8x16xf32>
    %c0_8 = arith.constant 0 : index
    %c0_9 = arith.constant 0 : index
    %9 = vector.load %arg5[%c0_8, %c0_9] : memref<1x16xf32, #tpu.memory_space<vmem>>, vector<1x16xf32>
    %10 = vector.broadcast %9 : vector<1x16xf32> to vector<8x16xf32>
    %11 = arith.addf %8, %10 : vector<8x16xf32>
    %c0_10 = arith.constant 0 : index
    %c0_11 = arith.constant 0 : index
    %12 = vector.load %arg6[%c0_10, %c0_11] : memref<8x16xf32, #tpu.memory_space<vmem>>, vector<8x16xf32>
    tpu.vector_store %arg6[%c0_10, %c0_11], %11 {strides = array<i32>} : memref<8x16xf32, #tpu.memory_space<vmem>>, vector<8x16xf32>,
    return
  }
  func.func @transform_0(%arg0: i32) -> (i32, i32) {
    %c0_i32 = arith.constant 0 : i32
    %c0_i32_0 = arith.constant 0 : i32
    return %arg0, %c0_i32 : i32, i32
  }
  func.func @transform_1(%arg0: i32) -> (i32, i32) {
    %c0_i32 = arith.constant 0 : i32
    %c0_i32_0 = arith.constant 0 : i32
    %c0_i32_1 = arith.constant 0 : i32
    return %c0_i32, %c0_i32_0 : i32, i32
  }
  func.func @transform_2(%arg0: i32) -> (i32, i32) {
    %c0_i32 = arith.constant 0 : i32
    %c0_i32_0 = arith.constant 0 : i32
    %c0_i32_1 = arith.constant 0 : i32
    return %c0_i32, %c0_i32_0 : i32, i32
  }
  func.func @transform_3(%arg0: i32) -> (i32, i32) {
    %c0_i32 = arith.constant 0 : i32
    %c0_i32_0 = arith.constant 0 : i32
    %c0_i32_1 = arith.constant 0 : i32
    return %c0_i32, %c0_i32_0 : i32, i32
  }
  func.func @transform_4(%arg0: i32) -> (i32, i32) {
    %c0_i32 = arith.constant 0 : i32
    %c0_i32_0 = arith.constant 0 : i32
    %c0_i32_1 = arith.constant 0 : i32
    return %c0_i32, %c0_i32_0 : i32, i32
  }
  func.func @transform_5(%arg0: i32) -> (i32, i32) {
    %c0_i32 = arith.constant 0 : i32
    %c0_i32_0 = arith.constant 0 : i32
    return %arg0, %c0_i32 : i32, i32
  }
}

</mosaic_0001>

<bundles_post_ra>
// kernel: tpu_custom_call.1
= control target key start
LH: loop header
LB: loop body
LE: loop exit
PB: predicated region body
PF: predicated region fallthrough
CT: control target
= control target key end

     0   :  { %vm30_vm0 = vcmask 261120   ;;  %s248_s0 = inlined_call_operand.vmem [shape: f32[8,32], index: 0, kind: input, shape index: {}]   ;;  %s249_s1 = inlined_call_operand.vmem [shape: f32[32,128], index: 1, kind: input, shape index: {}]   ;;  %s250_s2 = inlined_call_operand.vmem [shape: f32[1,128], index: 2, kind: input, shape index: {}]   ;;  %s251_s3 = inlined_call_operand.vmem [shape: f32[128,16], index: 3, kind: input, shape index: {}]   ;;  %s252_s4 = inlined_call_operand.vmem [shape: f32[1,16], index: 4, kind: input, shape index: {}]   ;;  %s253_s5 = inlined_call_operand.hbm [shape: f32[8,16], index: 5, kind: output, shape index: {}]  }
   0x1   :  { %v25_v0 = vld [vmem:[%s249_s1 + $0x18] sm:$0xff]  ;;  %v24_v1 = vld [vmem:[%s249_s1 + $0x10] sm:$0xff]  ;;  %v23_v3 = vld [vmem:[%s249_s1 + $0x8] sm:$0xff] }
   0x2   :  { %46 = vmatpush.msra.mxu0 %v25_v0  ;;  %v70_v2 = vld [vmem:[%s251_s3 + $0x78] sm:$0xff]  ;;  %v69_v4 = vld [vmem:[%s251_s3 + $0x70] sm:$0xff]  ;;  %v68_v5 = vld [vmem:[%s251_s3 + $0x68] sm:$0xff] }
   0x3   :  { %75 = vmatpush.msra.mxu1 %v70_v2  ;;  %v22_v6 = vld [vmem:[%s249_s1] sm:$0xff] }
   0x4   :  { %47 = vmatpush.msra.mxu0 %v24_v1  ;;  %v21_v7 = vld [vmem:[%s248_s0] sm:$0xff] }
   0x5   :  { %76 = vmatpush.msra.mxu1 %v69_v4  ;;  %v67_v8 = vld [vmem:[%s251_s3 + $0x60] sm:$0xff] }
   0x6   :  { %48 = vmatpush.msra.mxu0 %v23_v3 }
   0x7   :  { %77 = vmatpush.msra.mxu1 %v68_v5 }
   0x8   :  { %10 = vsyncpa [#allocation3], 0  ;;  %49 = vmatpush.msra.mxu0 %v22_v6  ;;  %v66_v9 = vld [vmem:[%s251_s3 + $0x58] sm:$0xff]  ;;  %v65_v10 = vld [vmem:[%s251_s3 + $0x50] sm:$0xff]  ;;  %s145_s12 = smov [#allocation2]   ;;  %vm95_vm1 = vcmask 130048  }
   0x9   :  { %113 = vmatmul.msk.f32.vlgmr.msra.gmra.mxu0 %vm30_vm0, %v21_v7  ;;  %78 = vmatpush.msra.mxu1 %v67_v8  ;;  %v64_v11 = vld [vmem:[%s251_s3 + $0x48] sm:$0xff]  ;;  %v63_v12 = vld [vmem:[%s251_s3 + $0x40] sm:$0xff]  ;;  %v62_v13 = vld [vmem:[%s251_s3 + $0x38] sm:$0xff]  ;;  %s102_s1 = sshll.u32 %s145_s12, 4  ;;  %s103_s1 = int_to_ptr.vmem [resolvable:$true] %s102_s1 }
   0xa   :  { %v61_v14 = vld [vmem:[%s251_s3 + $0x30] sm:$0xff]  ;;  %v60_v15 = vld [vmem:[%s251_s3 + $0x28] sm:$0xff]  ;;  %v59_v16 = vld [vmem:[%s251_s3 + $0x20] sm:$0xff] }
   0xb   :  { %79 = vmatpush.msra.mxu1 %v66_v9  ;;  %v58_v17 = vld [vmem:[%s251_s3 + $0x18] sm:$0xff]  ;;  %v57_v18 = vld [vmem:[%s251_s3 + $0x10] sm:$0xff]  ;;  %v56_v19 = vld [vmem:[%s251_s3 + $0x8] sm:$0xff] }
   0xc   :  { %v55_v20 = vld [vmem:[%s251_s3] sm:$0xff]  ;;  %s104_s3 = sshll.u32 %s253_s5, 4  ;;  %s105_s3 = int_to_ptr.hbm [resolvable:$true] %s104_s3 }
   0xd   :  { %80 = vmatpush.msra.mxu1 %v65_v10  ;;  %v115_v21 = vld [vmem:[%s250_s2] ss:$0 sm:$0xff] }
   0xe   :  { %v116_v25 = vld [vmem:[%s252_s4] ss:$0 sm:$0xff] }
   0xf   :  { %81 = vmatpush.msra.mxu1 %v64_v11 }
  0x11   :  { %82 = vmatpush.msra.mxu1 %v63_v12 }
  0x13   :  { %83 = vmatpush.msra.mxu1 %v62_v13 }
  0x15   :  { %84 = vmatpush.msra.mxu1 %v61_v14 }
  0x17   :  { %85 = vmatpush.msra.mxu1 %v60_v15 }
  0x19   :  { %86 = vmatpush.msra.mxu1 %v59_v16 }
  0x1b   :  { %87 = vmatpush.msra.mxu1 %v58_v17 }
  0x1d   :  { %88 = vmatpush.msra.mxu1 %v57_v18 }
  0x1f   :  { %89 = vmatpush.msra.mxu1 %v56_v19 }
  0x21   :  { %90 = vmatpush.msra.mxu1 %v55_v20 }
  0x86   :  { %v51_v22 = vpop.f32.mrf.mxu0 }
  0x87   :  { %v52_v23 = vadd.f32 %v115_v21, %v51_v22 }
  0x89   :  { %117 = vtanh.f32 %v52_v23 }
  0x8f   :  { %v118_v24 = vpop.eup %117 }
  0x90   :  { %91 = vmatmul.f32.vlgmr.msra.gmra.mxu1 %v118_v24 }
 0x10d   :  { %v92_v26 = vpop.f32.mrf.mxu1 }
 0x10e   :  { %v93_v27 = vadd.f32 %v116_v25, %v92_v26 }
 0x110   :  { %96 = vst.msk [vmem:[#allocation2] sm:$0xff] %vm95_vm1, %v93_v27 }
 0x111   :  { %107 = dma.vmem_to_hbm [thread:$0]  %s103_s1, 128, %s105_s3, [#allocation3]  }
 0x112   :  { %143 = dma.done.wait [#allocation3], 128  }
 0x113   :  { %144 = vsyncadd [#allocation3], 4294967168 }
 0x114   :  { %112 = vsyncpa [#allocation3], 1 }

</bundles_post_ra>
